<compile_context>
chip_gen: v7x
topology: tpu7x:2x2x1
jax: 0.10.0
libtpu: 0.0.40
codegen_flags: <defaults>
</compile_context>

<pallas_src>
import functools

import jax
import jax.numpy as jnp
from jax.experimental import pallas as pl
from jax.experimental.pallas import tpu as pltpu


def lstm_chunk_kernel(gx_ref, whh_ref, b_ref, h0_ref, c0_ref, hT_ref, cT_ref,
                      *, seq_len, time_chunk, unroll, needs_mask):
    """One grid step = `time_chunk` sequential LSTM cell updates for one batch block.

    gx_ref : (Tc, Bb, 4*Hp) bf16  precomputed x_t @ W_ih^T, time-major (no bias)
    whh_ref: (Hp, 4*Hp)     bf16  recurrent weights (gate blocks lane-aligned at k*Hp)
    b_ref  : (1, 4*Hp)      f32   b_ih + b_hh (added in f32 in-kernel)
    h0/c0  : (Bb, Hp)       f32   initial hidden state (only read on chunk 0)
    hT/cT  : (Bb, Hp)       f32   output refs; resident across the time axis, so they ARE
                                  the recurrent carry (output-accumulator pattern).
    """
    chunk = pl.program_id(1)
    Hp = hT_ref.shape[-1]

    # Initialize the carry from the provided hidden state on the first time chunk.
    @pl.when(chunk == 0)
    def _():
        hT_ref[...] = h0_ref[...]
        cT_ref[...] = c0_ref[...]

    w_hh = whh_ref[...]     # hoisted: loaded once per chunk, reused by every unrolled step
    bias = b_ref[...]       # (1, 4Hp) f32, broadcasts over the batch rows
    t_base = chunk * time_chunk

    def step(s, carry):
        h, c = carry
        # (Bb, 4Hp): bf16-streamed input projection + f32 bias + recurrent MXU matmul
        # (bf16 operands, f32 accumulation).
        gates = (gx_ref[s].astype(jnp.float32) + bias
                 + jnp.dot(h.astype(jnp.bfloat16), w_hh,
                           preferred_element_type=jnp.float32))
        # PyTorch gate order i, f, g, o; each slice starts on a 128-lane boundary (Hp % 128 == 0)
        i = jax.nn.sigmoid(gates[:, 0 * Hp:1 * Hp])
        f = jax.nn.sigmoid(gates[:, 1 * Hp:2 * Hp])
        g = jnp.tanh(gates[:, 2 * Hp:3 * Hp])
        o = jax.nn.sigmoid(gates[:, 3 * Hp:4 * Hp])
        c_new = f * c + i * g
        h_new = o * jnp.tanh(c_new)
        if needs_mask:
            # Tail mask for T not divisible by Tc: padded steps are identity on the carry.
            valid = (t_base + s) < seq_len
            h_new = jnp.where(valid, h_new, h)
            c_new = jnp.where(valid, c_new, c)
        return h_new, c_new

    h, c = jax.lax.fori_loop(0, time_chunk, step, (hT_ref[...], cT_ref[...]),
                             unroll=unroll)
    hT_ref[...] = h
    cT_ref[...] = c


def _round_up(x, m):
    return (x + m - 1) // m * m


def _tpu_vmem_capacity_bytes():
    try:
        return int(pltpu.get_tpu_info().vmem_capacity_bytes)
    except Exception:
        return 64 * 2**20   # conservative (v7x-class) fallback


@functools.partial(jax.jit, static_argnames=("time_chunk",))
def baseline_forward(x_ids, h0, c0, emb_w, w_ih, w_hh, b_ih, b_hh, w_fc, b_fc,
                     time_chunk=None):
    """x_ids: (B, T) int32; h0/c0: (1, B, H); PyTorch-shaped LSTM/Linear weights.

    Returns (out (B,), (h_n (1,B,H), c_n (1,B,H))) matching BaselineModel.forward in eval mode.
    """
    B, T = x_ids.shape
    E = emb_w.shape[1]
    H = w_hh.shape[1]
    Hp = _round_up(H, 128)          # lane-aligned hidden dim
    G = 4 * Hp

    # --- Re-layout PyTorch weights: pad each of the 4 gate blocks from H -> Hp rows/cols.
    def pad_gates(w):               # (4H, ...) -> (4, Hp, ...)
        w4 = w.reshape(4, H, *w.shape[1:])
        pad = [(0, 0)] * w4.ndim
        pad[1] = (0, Hp - H)
        return jnp.pad(w4, pad)

    w_ih_p = pad_gates(w_ih).reshape(G, E)                              # (4Hp, E)
    w_hh_p = jnp.pad(pad_gates(w_hh), ((0, 0), (0, 0), (0, Hp - H)))    # (4, Hp, Hp)
    w_hh_p = w_hh_p.reshape(G, Hp)
    b_p = pad_gates(b_ih + b_hh).reshape(1, G).astype(jnp.float32)      # (1, 4Hp)

    w_ih_t = jnp.transpose(w_ih_p).astype(jnp.bfloat16)                 # (E, 4Hp) bf16
    w_hh_t = jnp.transpose(w_hh_p).astype(jnp.bfloat16)                 # (Hp, 4Hp) bf16

    h0p = jnp.pad(h0[0], ((0, 0), (0, Hp - H))).astype(jnp.float32)     # (B, Hp)
    c0p = jnp.pad(c0[0], ((0, 0), (0, Hp - H))).astype(jnp.float32)     # (B, Hp)

    # --- Embedding lookup + hoisted input projection, produced time-major NATIVELY so no
    #     bte->tbg relayout pass is materialized.  Streamed to the kernel in bf16.
    embeds_tm = jnp.take(emb_w, x_ids.T, axis=0).astype(jnp.bfloat16)   # (T, B, E)
    gates_x = jnp.einsum("tbe,eg->tbg", embeds_tm, w_ih_t,
                         preferred_element_type=jnp.float32)            # (T, B, 4Hp) f32
    gates_x = gates_x.astype(jnp.bfloat16)                              # stream bf16

    # --- Batch blocking: split batch across 2 blocks when large enough (keeps each block a
    #     multiple of 8 sublanes) so v7x's second TensorCore takes half the rows.
    n_bblocks = 2 if (B % 16 == 0) else 1
    Bb = B // n_bblocks
    Bb_pad = _round_up(Bb, 8)

    # --- Per-generation Tc / VMEM sizing.
    vmem_cap = _tpu_vmem_capacity_bytes()
    pipeline_budget = 40 * 2**20 if vmem_cap <= 80 * 2**20 else 96 * 2**20
    fixed_bytes = (2 * Hp * G * 2          # W_hh^T bf16, 2 buffers (constant index map)
                   + 2 * 8 * G * 4         # bias (padded to 8 sublanes), 2 buffers
                   + 2 * 2 * Bb_pad * Hp * 4   # h0, c0, 2 buffers each
                   + 2 * 2 * Bb_pad * Hp * 4)  # hT, cT outputs, 2 buffers each
    step_bytes = 2 * Bb_pad * G * 2        # one double-buffered bf16 timestep of gates_x
    gx_budget = max(pipeline_budget - fixed_bytes, 1 * 2**20)
    tc_cap = max(int(gx_budget // step_bytes), 1)
    Tc = min(T, tc_cap)
    if time_chunk is not None:
        Tc = max(1, min(Tc, int(time_chunk)))

    n_chunks = pl.cdiv(T, Tc)
    Tp = n_chunks * Tc
    needs_mask = (Tp != T)
    if needs_mask:
        gates_x = jnp.pad(gates_x, ((0, Tp - T), (0, 0), (0, 0)))

    # Honest footprint -> vmem_limit (no 4x fudge), clamped below physical capacity.
    footprint = Tc * step_bytes + fixed_bytes
    vmem_limit = int(min(max(footprint * 5 // 4 + (4 << 20), 32 << 20),
                         int(vmem_cap * 0.9)))

    # Throttle inner-loop unroll by the vreg footprint of the per-step (Bb, 4Hp) f32 gates tile.
    gate_vregs = max(1, (Bb_pad * G) // 1024)
    if Tc <= 8:
        unroll = True
    elif gate_vregs >= 32:
        unroll = 2
    elif gate_vregs >= 16:
        unroll = 4
    else:
        unroll = 8

    kernel = functools.partial(lstm_chunk_kernel, seq_len=T, time_chunk=Tc,
                               unroll=unroll, needs_mask=needs_mask)

    hT, cT = pl.pallas_call(
        kernel,
        out_shape=(
            jax.ShapeDtypeStruct((B, Hp), jnp.float32),   # h_T (padded)
            jax.ShapeDtypeStruct((B, Hp), jnp.float32),   # c_T (padded)
        ),
        grid_spec=pltpu.PrefetchScalarGridSpec(
            num_scalar_prefetch=0,
            grid=(n_bblocks, n_chunks),
            in_specs=[
                pl.BlockSpec((Tc, Bb, G), lambda b, t: (t, b, 0)),   # gates_x time chunk (bf16)
                pl.BlockSpec((Hp, G), lambda b, t: (0, 0)),          # W_hh^T (bf16), resident
                pl.BlockSpec((1, G), lambda b, t: (0, 0)),           # bias (f32)
                pl.BlockSpec((Bb, Hp), lambda b, t: (b, 0)),         # h0
                pl.BlockSpec((Bb, Hp), lambda b, t: (b, 0)),         # c0
            ],
            out_specs=(
                pl.BlockSpec((Bb, Hp), lambda b, t: (b, 0)),         # h carry / output
                pl.BlockSpec((Bb, Hp), lambda b, t: (b, 0)),         # c carry / output
            ),
        ),
        compiler_params=pltpu.CompilerParams(
            dimension_semantics=("parallel", "arbitrary"),   # batch parallel, time sequential
            vmem_limit_bytes=vmem_limit,
        ),
    )(gates_x, w_hh_t, b_p, h0p, c0p)

    h_n = hT[:, :H]
    c_n = cT[:, :H]

    # Dropout is identity in eval mode; fc + sigmoid on (B, H) -> (B, 1) is negligible glue.
    # TODO(synk): training-mode dropout (stochastic mask) is not modeled.
    out = jax.nn.sigmoid(h_n @ w_fc.T + b_fc)        # (B, 1)
    # out.view(B, -1)[:, -1] with output_size == 1 reduces to sigmoid(fc(h_T)).
    return out[:, 0], (h_n[None, :, :], c_n[None, :, :])


def _reference_forward(x_ids, h0, c0, emb_w, w_ih, w_hh, b_ih, b_hh, w_fc, b_fc):
    """Pure-JAX f32 reference of BaselineModel.forward (eval mode)."""
    embeds = jnp.take(emb_w, x_ids, axis=0)                 # (B, T, E)

    def cell(carry, x_t):
        h, c = carry
        gates = x_t @ w_ih.T + h @ w_hh.T + b_ih + b_hh
        i, f, g, o = jnp.split(gates, 4, axis=-1)
        i, f, o = jax.nn.sigmoid(i), jax.nn.sigmoid(f), jax.nn.sigmoid(o)
        g = jnp.tanh(g)
        c = f * c + i * g
        h = o * jnp.tanh(c)
        return (h, c), h

    (hT, cT), _ = jax.lax.scan(cell, (h0[0], c0[0]), jnp.transpose(embeds, (1, 0, 2)))
    out = jax.nn.sigmoid(hT @ w_fc.T + b_fc)[:, 0]
    return out, (hT[None], cT[None])


if __name__ == "__main__":
    # Small shapes consistent with the module's forward pass.
    B, T = 2, 8          # batch, sequence length
    V, E = 50, 16        # vocab size, embedding dim (weights_matrix shape)
    H = 32               # hidden_dim (small stand-in for 300)
    OUT = 1              # output_size

    key = jax.random.PRNGKey(0)
    ks = jax.random.split(key, 8)

    emb_w = jax.random.normal(ks[0], (V, E), jnp.float32) * 0.1
    w_ih = jax.random.normal(ks[1], (4 * H, E), jnp.float32) * 0.1    # torch weight_ih_l0
    w_hh = jax.random.normal(ks[2], (4 * H, H), jnp.float32) * 0.1    # torch weight_hh_l0
    b_ih = jax.random.normal(ks[3], (4 * H,), jnp.float32) * 0.1
    b_hh = jax.random.normal(ks[4], (4 * H,), jnp.float32) * 0.1
    w_fc = jax.random.normal(ks[5], (OUT, H), jnp.float32) * 0.1      # torch fc.weight
    b_fc = jax.random.normal(ks[6], (OUT,), jnp.float32) * 0.1

    # Inputs: token ids + zero hidden state (init_hidden semantics).
    x_ids = jax.random.randint(ks[7], (B, T), 0, V, dtype=jnp.int32)
    h0 = jnp.zeros((1, B, H), jnp.float32)
    c0 = jnp.zeros((1, B, H), jnp.float32)

    # time_chunk=3 with T=8 -> 3 chunks (one padded tail step), exercising both the
    # cross-chunk output-resident carry and the in-kernel tail mask.
    out, (h_n, c_n) = baseline_forward(
        x_ids, h0, c0, emb_w, w_ih, w_hh, b_ih, b_hh, w_fc, b_fc, time_chunk=3)
    jax.block_until_ready((out, h_n, c_n))

    assert out.shape == (B,)
    assert h_n.shape == (1, B, H) and c_n.shape == (1, B, H)

    # Correctness vs. pure-JAX f32 reference (loose tol: kernel uses bf16 MXU inputs / bf16
    # streamed input projection, f32 accumulation and f32 carry).
    ref_out, (ref_h, ref_c) = _reference_forward(
        x_ids, h0, c0, emb_w, w_ih, w_hh, b_ih, b_hh, w_fc, b_fc)
    assert bool(jnp.allclose(out, ref_out, atol=5e-2, rtol=5e-2))
    assert bool(jnp.allclose(h_n, ref_h, atol=5e-2, rtol=5e-2))
    assert bool(jnp.allclose(c_n, ref_c, atol=5e-2, rtol=5e-2))

    print("KERNEL_OK")
</pallas_src>

<mosaic_0001>
module attributes {stable_mosaic.version = 11 : i64} {
  func.func @lstm_chunk_kernel(%arg0: i32, %arg1: i32, %arg2: memref<3x2x512xbf16, #tpu.memory_space<vmem>>, %arg3: memref<128x512xbf16, #tpu.memory_space<vmem>>, %arg4: memref<1x512xf32, #tpu.memory_space<vmem>>, %arg5: memref<2x128xf32, #tpu.memory_space<vmem>>, %arg6: memref<2x128xf32, #tpu.memory_space<vmem>>, %arg7: memref<2x128xf32, #tpu.memory_space<vmem>>, %arg8: memref<2x128xf32, #tpu.memory_space<vmem>>) attributes {dimension_semantics = [#tpu.dimension_semantics<parallel>, #tpu.dimension_semantics<arbitrary>], iteration_bounds = array<i64: 1, 3>, scalar_prefetch = 0 : i64, scratch_operands = 0 : i64, tpu.core_type = #tpu.core_type<tc>, window_params = [{transform_indices = @transform_0, window_bounds = array<i64: 3, 2, 512>}, {pipeline_mode = #tpu.pipeline_mode<synchronous>, transform_indices = @transform_1, window_bounds = array<i64: 128, 512>}, {pipeline_mode = #tpu.pipeline_mode<synchronous>, transform_indices = @transform_2, window_bounds = array<i64: 1, 512>}, {transform_indices = @transform_3, window_bounds = array<i64: 2, 128>}, {transform_indices = @transform_4, window_bounds = array<i64: 2, 128>}, {transform_indices = @transform_5, window_bounds = array<i64: 2, 128>}, {transform_indices = @transform_6, window_bounds = array<i64: 2, 128>}]} {
    %c0_i32 = arith.constant 0 : i32
    %0 = arith.cmpi eq, %arg1, %c0_i32 : i32
    %1 = arith.extui %0 : i1 to i32
    %c0_i32_0 = arith.constant 0 : i32
    %2 = arith.cmpi ne, %1, %c0_i32_0 : i32
    scf.if %2 {
      %c0_33 = arith.constant 0 : index
      %c0_34 = arith.constant 0 : index
      %124 = vector.load %arg5[%c0_33, %c0_34] : memref<2x128xf32, #tpu.memory_space<vmem>>, vector<2x128xf32>
      %c0_35 = arith.constant 0 : index
      %c0_36 = arith.constant 0 : index
      %125 = vector.load %arg7[%c0_35, %c0_36] : memref<2x128xf32, #tpu.memory_space<vmem>>, vector<2x128xf32>
      tpu.vector_store %arg7[%c0_35, %c0_36], %124 {strides = array<i32>} : memref<2x128xf32, #tpu.memory_space<vmem>>, vector<2x128xf32>,
      %c0_37 = arith.constant 0 : index
      %c0_38 = arith.constant 0 : index
      %126 = vector.load %arg6[%c0_37, %c0_38] : memref<2x128xf32, #tpu.memory_space<vmem>>, vector<2x128xf32>
      %c0_39 = arith.constant 0 : index
      %c0_40 = arith.constant 0 : index
      %127 = vector.load %arg8[%c0_39, %c0_40] : memref<2x128xf32, #tpu.memory_space<vmem>>, vector<2x128xf32>
      tpu.vector_store %arg8[%c0_39, %c0_40], %126 {strides = array<i32>} : memref<2x128xf32, #tpu.memory_space<vmem>>, vector<2x128xf32>,
    } else {
    }
    %c0 = arith.constant 0 : index
    %c0_1 = arith.constant 0 : index
    %3 = vector.load %arg3[%c0, %c0_1] : memref<128x512xbf16, #tpu.memory_space<vmem>>, vector<128x512xbf16>
    %c0_2 = arith.constant 0 : index
    %c0_3 = arith.constant 0 : index
    %4 = vector.load %arg4[%c0_2, %c0_3] : memref<1x512xf32, #tpu.memory_space<vmem>>, vector<1x512xf32>
    %c3_i32 = arith.constant 3 : i32
    %5 = arith.muli %arg1, %c3_i32 : i32
    %c0_4 = arith.constant 0 : index
    %c0_5 = arith.constant 0 : index
    %6 = vector.load %arg7[%c0_4, %c0_5] : memref<2x128xf32, #tpu.memory_space<vmem>>, vector<2x128xf32>
    %c0_6 = arith.constant 0 : index
    %c0_7 = arith.constant 0 : index
    %7 = vector.load %arg8[%c0_6, %c0_7] : memref<2x128xf32, #tpu.memory_space<vmem>>, vector<2x128xf32>
    %c0_i32_8 = arith.constant 0 : i32
    %8 = arith.index_cast %c0_i32_8 : i32 to index
    %c0_9 = arith.constant 0 : index
    %c0_10 = arith.constant 0 : index
    %9 = vector.load %arg2[%8, %c0_9, %c0_10] : memref<3x2x512xbf16, #tpu.memory_space<vmem>>, vector<1x2x512xbf16>
    %10 = vector.shape_cast %9 : vector<1x2x512xbf16> to vector<2x512xbf16>
    %11 = arith.extf %10 : vector<2x512xbf16> to vector<2x512xf32>
    %12 = vector.broadcast %4 : vector<1x512xf32> to vector<2x512xf32>
    %13 = arith.addf %11, %12 : vector<2x512xf32>
    %14 = arith.truncf %6 : vector<2x128xf32> to vector<2x128xbf16>
    %cst = arith.constant dense<0.000000e+00> : vector<2x512xf32>
    %15 = tpu.matmul %14, %3, %cst {dimension_numbers = #tpu.dot_dimension_numbers<[1], [0], [0], [1], [0, 0, 1, 1], [], []>} : vector<2x128xbf16>, vector<128x512xbf16>, vector<2x512xf32> -> vector<2x512xf32>
    %16 = arith.addf %13, %15 : vector<2x512xf32>
    %17 = vector.extract_strided_slice %16 {offsets = [0, 0], sizes = [2, 128], strides = [1, 1]} : vector<2x512xf32> to vector<2x128xf32>
    %18 = arith.negf %17 : vector<2x128xf32>
    %19 = math.exp %18 : vector<2x128xf32>
    %cst_11 = arith.constant 1.000000e+00 : f32
    %20 = vector.broadcast %cst_11 : f32 to vector<2x128xf32>
    %21 = arith.addf %20, %19 : vector<2x128xf32>
    %22 = arith.divf %20, %21 : vector<2x128xf32>
    %23 = vector.extract_strided_slice %16 {offsets = [0, 128], sizes = [2, 128], strides = [1, 1]} : vector<2x512xf32> to vector<2x128xf32>
    %24 = arith.negf %23 : vector<2x128xf32>
    %25 = math.exp %24 : vector<2x128xf32>
    %cst_12 = arith.constant 1.000000e+00 : f32
    %26 = vector.broadcast %cst_12 : f32 to vector<2x128xf32>
    %27 = arith.addf %26, %25 : vector<2x128xf32>
    %28 = arith.divf %26, %27 : vector<2x128xf32>
    %29 = vector.extract_strided_slice %16 {offsets = [0, 256], sizes = [2, 128], strides = [1, 1]} : vector<2x512xf32> to vector<2x128xf32>
    %30 = math.tanh %29 : vector<2x128xf32>
    %31 = vector.extract_strided_slice %16 {offsets = [0, 384], sizes = [2, 128], strides = [1, 1]} : vector<2x512xf32> to vector<2x128xf32>
    %32 = arith.negf %31 : vector<2x128xf32>
    %33 = math.exp %32 : vector<2x128xf32>
    %cst_13 = arith.constant 1.000000e+00 : f32
    %34 = vector.broadcast %cst_13 : f32 to vector<2x128xf32>
    %35 = arith.addf %34, %33 : vector<2x128xf32>
    %36 = arith.divf %34, %35 : vector<2x128xf32>
    %37 = arith.mulf %28, %7 : vector<2x128xf32>
    %38 = arith.mulf %22, %30 : vector<2x128xf32>
    %39 = arith.addf %37, %38 : vector<2x128xf32>
    %40 = math.tanh %39 : vector<2x128xf32>
    %41 = arith.mulf %36, %40 : vector<2x128xf32>
    %42 = arith.addi %5, %c0_i32_8 : i32
    %c8_i32 = arith.constant 8 : i32
    %43 = arith.cmpi slt, %42, %c8_i32 : i32
    %44 = arith.select %43, %41, %6 : vector<2x128xf32>
    %45 = arith.select %43, %39, %7 : vector<2x128xf32>
    %c1_i32 = arith.constant 1 : i32
    %46 = arith.index_cast %c1_i32 : i32 to index
    %c0_14 = arith.constant 0 : index
    %c0_15 = arith.constant 0 : index
    %47 = vector.load %arg2[%46, %c0_14, %c0_15] : memref<3x2x512xbf16, #tpu.memory_space<vmem>>, vector<1x2x512xbf16>
    %48 = vector.shape_cast %47 : vector<1x2x512xbf16> to vector<2x512xbf16>
    %49 = arith.extf %48 : vector<2x512xbf16> to vector<2x512xf32>
    %50 = vector.broadcast %4 : vector<1x512xf32> to vector<2x512xf32>
    %51 = arith.addf %49, %50 : vector<2x512xf32>
    %52 = arith.truncf %44 : vector<2x128xf32> to vector<2x128xbf16>
    %cst_16 = arith.constant dense<0.000000e+00> : vector<2x512xf32>
    %53 = tpu.matmul %52, %3, %cst_16 {dimension_numbers = #tpu.dot_dimension_numbers<[1], [0], [0], [1], [0, 0, 1, 1], [], []>} : vector<2x128xbf16>, vector<128x512xbf16>, vector<2x512xf32> -> vector<2x512xf32>
    %54 = arith.addf %51, %53 : vector<2x512xf32>
    %55 = vector.extract_strided_slice %54 {offsets = [0, 0], sizes = [2, 128], strides = [1, 1]} : vector<2x512xf32> to vector<2x128xf32>
    %56 = arith.negf %55 : vector<2x128xf32>
    %57 = math.exp %56 : vector<2x128xf32>
    %cst_17 = arith.constant 1.000000e+00 : f32
    %58 = vector.broadcast %cst_17 : f32 to vector<2x128xf32>
    %59 = arith.addf %58, %57 : vector<2x128xf32>
    %60 = arith.divf %58, %59 : vector<2x128xf32>
    %61 = vector.extract_strided_slice %54 {offsets = [0, 128], sizes = [2, 128], strides = [1, 1]} : vector<2x512xf32> to vector<2x128xf32>
    %62 = arith.negf %61 : vector<2x128xf32>
    %63 = math.exp %62 : vector<2x128xf32>
    %cst_18 = arith.constant 1.000000e+00 : f32
    %64 = vector.broadcast %cst_18 : f32 to vector<2x128xf32>
    %65 = arith.addf %64, %63 : vector<2x128xf32>
    %66 = arith.divf %64, %65 : vector<2x128xf32>
    %67 = vector.extract_strided_slice %54 {offsets = [0, 256], sizes = [2, 128], strides = [1, 1]} : vector<2x512xf32> to vector<2x128xf32>
    %68 = math.tanh %67 : vector<2x128xf32>
    %69 = vector.extract_strided_slice %54 {offsets = [0, 384], sizes = [2, 128], strides = [1, 1]} : vector<2x512xf32> to vector<2x128xf32>
    %70 = arith.negf %69 : vector<2x128xf32>
    %71 = math.exp %70 : vector<2x128xf32>
    %cst_19 = arith.constant 1.000000e+00 : f32
    %72 = vector.broadcast %cst_19 : f32 to vector<2x128xf32>
    %73 = arith.addf %72, %71 : vector<2x128xf32>
    %74 = arith.divf %72, %73 : vector<2x128xf32>
    %75 = arith.mulf %66, %45 : vector<2x128xf32>
    %76 = arith.mulf %60, %68 : vector<2x128xf32>
    %77 = arith.addf %75, %76 : vector<2x128xf32>
    %78 = math.tanh %77 : vector<2x128xf32>
    %79 = arith.mulf %74, %78 : vector<2x128xf32>
    %80 = arith.addi %5, %c1_i32 : i32
    %c8_i32_20 = arith.constant 8 : i32
    %81 = arith.cmpi slt, %80, %c8_i32_20 : i32
    %82 = arith.select %81, %79, %44 : vector<2x128xf32>
    %83 = arith.select %81, %77, %45 : vector<2x128xf32>
    %c2_i32 = arith.constant 2 : i32
    %84 = arith.index_cast %c2_i32 : i32 to index
    %c0_21 = arith.constant 0 : index
    %c0_22 = arith.constant 0 : index
    %85 = vector.load %arg2[%84, %c0_21, %c0_22] : memref<3x2x512xbf16, #tpu.memory_space<vmem>>, vector<1x2x512xbf16>
    %86 = vector.shape_cast %85 : vector<1x2x512xbf16> to vector<2x512xbf16>
    %87 = arith.extf %86 : vector<2x512xbf16> to vector<2x512xf32>
    %88 = vector.broadcast %4 : vector<1x512xf32> to vector<2x512xf32>
    %89 = arith.addf %87, %88 : vector<2x512xf32>
    %90 = arith.truncf %82 : vector<2x128xf32> to vector<2x128xbf16>
    %cst_23 = arith.constant dense<0.000000e+00> : vector<2x512xf32>
    %91 = tpu.matmul %90, %3, %cst_23 {dimension_numbers = #tpu.dot_dimension_numbers<[1], [0], [0], [1], [0, 0, 1, 1], [], []>} : vector<2x128xbf16>, vector<128x512xbf16>, vector<2x512xf32> -> vector<2x512xf32>
    %92 = arith.addf %89, %91 : vector<2x512xf32>
    %93 = vector.extract_strided_slice %92 {offsets = [0, 0], sizes = [2, 128], strides = [1, 1]} : vector<2x512xf32> to vector<2x128xf32>
    %94 = arith.negf %93 : vector<2x128xf32>
    %95 = math.exp %94 : vector<2x128xf32>
    %cst_24 = arith.constant 1.000000e+00 : f32
    %96 = vector.broadcast %cst_24 : f32 to vector<2x128xf32>
    %97 = arith.addf %96, %95 : vector<2x128xf32>
    %98 = arith.divf %96, %97 : vector<2x128xf32>
    %99 = vector.extract_strided_slice %92 {offsets = [0, 128], sizes = [2, 128], strides = [1, 1]} : vector<2x512xf32> to vector<2x128xf32>
    %100 = arith.negf %99 : vector<2x128xf32>
    %101 = math.exp %100 : vector<2x128xf32>
    %cst_25 = arith.constant 1.000000e+00 : f32
    %102 = vector.broadcast %cst_25 : f32 to vector<2x128xf32>
    %103 = arith.addf %102, %101 : vector<2x128xf32>
    %104 = arith.divf %102, %103 : vector<2x128xf32>
    %105 = vector.extract_strided_slice %92 {offsets = [0, 256], sizes = [2, 128], strides = [1, 1]} : vector<2x512xf32> to vector<2x128xf32>
    %106 = math.tanh %105 : vector<2x128xf32>
    %107 = vector.extract_strided_slice %92 {offsets = [0, 384], sizes = [2, 128], strides = [1, 1]} : vector<2x512xf32> to vector<2x128xf32>
    %108 = arith.negf %107 : vector<2x128xf32>
    %109 = math.exp %108 : vector<2x128xf32>
    %cst_26 = arith.constant 1.000000e+00 : f32
    %110 = vector.broadcast %cst_26 : f32 to vector<2x128xf32>
    %111 = arith.addf %110, %109 : vector<2x128xf32>
    %112 = arith.divf %110, %111 : vector<2x128xf32>
    %113 = arith.mulf %104, %83 : vector<2x128xf32>
    %114 = arith.mulf %98, %106 : vector<2x128xf32>
    %115 = arith.addf %113, %114 : vector<2x128xf32>
    %116 = math.tanh %115 : vector<2x128xf32>
    %117 = arith.mulf %112, %116 : vector<2x128xf32>
    %118 = arith.addi %5, %c2_i32 : i32
    %c8_i32_27 = arith.constant 8 : i32
    %119 = arith.cmpi slt, %118, %c8_i32_27 : i32
    %120 = arith.select %119, %117, %82 : vector<2x128xf32>
    %121 = arith.select %119, %115, %83 : vector<2x128xf32>
    %c3_i32_28 = arith.constant 3 : i32
    %c0_29 = arith.constant 0 : index
    %c0_30 = arith.constant 0 : index
    %122 = vector.load %arg7[%c0_29, %c0_30] : memref<2x128xf32, #tpu.memory_space<vmem>>, vector<2x128xf32>
    tpu.vector_store %arg7[%c0_29, %c0_30], %120 {strides = array<i32>} : memref<2x128xf32, #tpu.memory_space<vmem>>, vector<2x128xf32>,
    %c0_31 = arith.constant 0 : index
    %c0_32 = arith.constant 0 : index
    %123 = vector.load %arg8[%c0_31, %c0_32] : memref<2x128xf32, #tpu.memory_space<vmem>>, vector<2x128xf32>
    tpu.vector_store %arg8[%c0_31, %c0_32], %121 {strides = array<i32>} : memref<2x128xf32, #tpu.memory_space<vmem>>, vector<2x128xf32>,
    return
  }
  func.func @transform_0(%arg0: i32, %arg1: i32) -> (i32, i32, i32) {
    %c0_i32 = arith.constant 0 : i32
    %c0_i32_0 = arith.constant 0 : i32
    return %arg1, %arg0, %c0_i32 : i32, i32, i32
  }
  func.func @transform_1(%arg0: i32, %arg1: i32) -> (i32, i32) {
    %c0_i32 = arith.constant 0 : i32
    %c0_i32_0 = arith.constant 0 : i32
    %c0_i32_1 = arith.constant 0 : i32
    return %c0_i32, %c0_i32_0 : i32, i32
  }
  func.func @transform_2(%arg0: i32, %arg1: i32) -> (i32, i32) {
    %c0_i32 = arith.constant 0 : i32
    %c0_i32_0 = arith.constant 0 : i32
    %c0_i32_1 = arith.constant 0 : i32
    return %c0_i32, %c0_i32_0 : i32, i32
  }
  func.func @transform_3(%arg0: i32, %arg1: i32) -> (i32, i32) {
    %c0_i32 = arith.constant 0 : i32
    %c0_i32_0 = arith.constant 0 : i32
    return %arg0, %c0_i32 : i32, i32
  }
  func.func @transform_4(%arg0: i32, %arg1: i32) -> (i32, i32) {
    %c0_i32 = arith.constant 0 : i32
    %c0_i32_0 = arith.constant 0 : i32
    return %arg0, %c0_i32 : i32, i32
  }
  func.func @transform_5(%arg0: i32, %arg1: i32) -> (i32, i32) {
    %c0_i32 = arith.constant 0 : i32
    %c0_i32_0 = arith.constant 0 : i32
    return %arg0, %c0_i32 : i32, i32
  }
  func.func @transform_6(%arg0: i32, %arg1: i32) -> (i32, i32) {
    %c0_i32 = arith.constant 0 : i32
    %c0_i32_0 = arith.constant 0 : i32
    return %arg0, %c0_i32 : i32, i32
  }
}

</mosaic_0001>

<bundles_post_ra>
// kernel: baseline_forward.1
= control target key start
LH: loop header
LB: loop body
LE: loop exit
PB: predicated region body
PF: predicated region fallthrough
CT: control target
= control target key end

     0   :  { %s1368_s21 = smov 0   ;;  %s1370_s22 = smov 0   ;;  %s1734_s0 = inlined_call_operand.vmem [shape: bf16[9,2,512], index: 0, kind: input, shape index: {}]   ;;  %s1735_s1 = inlined_call_operand.vmem [shape: bf16[128,512], index: 1, kind: input, shape index: {}]   ;;  %s1736_s2 = inlined_call_operand.vmem [shape: f32[1,512], index: 2, kind: input, shape index: {}]   ;;  %s1737_s3 = inlined_call_operand.vmem [shape: f32[2,128], index: 3, kind: input, shape index: {}]   ;;  %s1738_s4 = inlined_call_operand.vmem [shape: f32[2,128], index: 4, kind: input, shape index: {}]   ;;  %s1739_s5 = inlined_call_operand.vmem [shape: f32[2,128], index: 5, kind: output, shape index: {0}]   ;;  %s1740_s6 = inlined_call_operand.vmem [shape: f32[2,128], index: 6, kind: output, shape index: {1}]  }
   0x1   :  { %s1372_s23 = smov 0  }
   0x2 LB: > { %s26_s24 = sadd.s32 1, %s1325_s22  ;;  %p1135_p0 = scmp.ge.s32.totalorder %s1329_s23, 1  ;;  %s1329_s23 = sphi %s1372_s23, %s17_s23   ;;  %s1325_s22 = sphi %s1370_s22, %s1742_s22   ;;  %s1321_s21 = sphi %s1368_s21, %s1741_s21  }
   0x3   : > { %p27_p1 = scmp.ge.s32.totalorder %s26_s24, 3  ;;  %p252_p2 = scmp.lt.s32.totalorder %s1329_s23, 4 }
   0x5   : > { %s1744_s24 = smov (%p27_p1, %s26_s24), 0  ;;  %p253_p3 = pnand %p1135_p0, %p252_p2 }
   0x6   : > { %s1386_s25 = smul.u32 (!%p253_p3), 3, %s1321_s21  ;;  %p1137_p5 = scmp.ne.s32.totalorder (!%p253_p3), %s1321_s21, 0 }
   0x7   : > { %256 = sbr.rel (%p253_p3) target bundleno = 862 (0x35e), region = 40 }
   0x8   : > { %p298_p4 = scmp.lt.s32.totalorder (!%p253_p3), %s1386_s25, 8 }
   0xe   : > { %s299_s26 = scalar_select %p298_p4, %s1386_s25, 8 }
   0xf   : > { %327 = sbr.rel (%p1137_p5) target bundleno = 22 (0x16), region = 44  ;;  %v328_v0 = vld [vmem:[%s1737_s3] sm:$0x3] (!%p1137_p5) }
  0x10   : > { %s1136_s27 = sshll.u32 %s299_s26, 2  ;;  %v330_v1 = vld [vmem:[%s1738_s4] sm:$0x3] (!%p1137_p5)  ;;  %329 = vst [vmem:[%s1739_s5] sm:$0x3] (!%p1137_p5), %v328_v0 }
  0x11   : > { %s1395_s30 = scalar_lea.vmem %s1734_s0, %s1136_s27  ;;  %331 = vst [vmem:[%s1740_s6] sm:$0x3] (!%p1137_p5), %v330_v1 }
  0x16 PF: > { %v1412_v2 = vld [vmem:[%s1735_s1 + $0x4] ss:$16 sps:$4 sm:$0xff]   ;;  %v1417_v3 = vld [vmem:[%s1735_s1 + $0xc] ss:$16 sps:$4 sm:$0xff]   ;;  %v1331_v4 = vmov 0   ;;  %v371_v37 = vlaneseq  ;;  %s850_s10 = sadd.s32 1, %s1386_s25 }
  0x17   : > { %599 = vmatprep.mubr.bf16.mxu0 %v1331_v4  ;;  %640 = vmatprep.mubr.bf16.mxu1 %v1331_v4  ;;  %v1425_v5 = vld [vmem:[%s1735_s1] ss:$16 sps:$4 sm:$0xff]   ;;  %v1430_v6 = vld [vmem:[%s1735_s1 + $0x8] ss:$16 sps:$4 sm:$0xff]   ;;  %v1436_v7 = vld [vmem:[%s1735_s1 + $0x24] ss:$16 sps:$4 sm:$0xff]  }
  0x18   : > { %567 = vmatprep.subr.bf16.mxu0 %v1412_v2  ;;  %608 = vmatprep.subr.bf16.mxu1 %v1417_v3  ;;  %v1443_v8 = vld [vmem:[%s1735_s1 + $0x2c] ss:$16 sps:$4 sm:$0xff]   ;;  %v1448_v9 = vld [vmem:[%s1735_s1 + $0x20] ss:$16 sps:$4 sm:$0xff]   ;;  %v1454_v10 = vld [vmem:[%s1735_s1 + $0x28] ss:$16 sps:$4 sm:$0xff]  }
  0x19   : > { %568 = vmatpush1.bf16.msra.mxu0 %v1425_v5  ;;  %609 = vmatpush1.bf16.msra.mxu1 %v1430_v6  ;;  %v1460_v11 = vld [vmem:[%s1735_s1 + $0x44] ss:$16 sps:$4 sm:$0xff]   ;;  %v1465_v12 = vld [vmem:[%s1735_s1 + $0x4c] ss:$16 sps:$4 sm:$0xff]   ;;  %v1470_v13 = vld [vmem:[%s1735_s1 + $0x40] ss:$16 sps:$4 sm:$0xff]  }
  0x1a   : > { %569 = vmatprep.subr.bf16.mxu0 %v1436_v7  ;;  %610 = vmatprep.subr.bf16.mxu1 %v1443_v8  ;;  %v1475_v14 = vld [vmem:[%s1735_s1 + $0x48] ss:$16 sps:$4 sm:$0xff]   ;;  %v1482_v15 = vld [vmem:[%s1735_s1 + $0x64] ss:$16 sps:$4 sm:$0xff]   ;;  %v1489_v16 = vld [vmem:[%s1735_s1 + $0x6c] ss:$16 sps:$4 sm:$0xff]  }
  0x1b   : > { %v1494_v17 = vld [vmem:[%s1735_s1 + $0x60] ss:$16 sps:$4 sm:$0xff]   ;;  %v1501_v18 = vld [vmem:[%s1735_s1 + $0x68] ss:$16 sps:$4 sm:$0xff]   ;;  %v1506_v19 = vld [vmem:[%s1735_s1 + $0x84] ss:$16 sps:$4 sm:$0xff]  }
  0x1c   : > { %v1513_v20 = vld [vmem:[%s1735_s1 + $0x8c] ss:$16 sps:$4 sm:$0xff]   ;;  %v1518_v21 = vld [vmem:[%s1735_s1 + $0x80] ss:$16 sps:$4 sm:$0xff]   ;;  %v1523_v22 = vld [vmem:[%s1735_s1 + $0x88] ss:$16 sps:$4 sm:$0xff]  }
  0x1d   : > { %570 = vmatpush1.bf16.msra.mxu0 %v1448_v9  ;;  %611 = vmatpush1.bf16.msra.mxu1 %v1454_v10  ;;  %v1530_v23 = vld [vmem:[%s1735_s1 + $0xa4] ss:$16 sps:$4 sm:$0xff]   ;;  %v1537_v24 = vld [vmem:[%s1735_s1 + $0xac] ss:$16 sps:$4 sm:$0xff]   ;;  %v1544_v25 = vld [vmem:[%s1735_s1 + $0xa0] ss:$16 sps:$4 sm:$0xff]  }
  0x1e   : > { %571 = vmatprep.subr.bf16.mxu0 %v1460_v11  ;;  %612 = vmatprep.subr.bf16.mxu1 %v1465_v12  ;;  %v1549_v26 = vld [vmem:[%s1735_s1 + $0xa8] ss:$16 sps:$4 sm:$0xff]   ;;  %v1556_v27 = vld [vmem:[%s1735_s1 + $0xc4] ss:$16 sps:$4 sm:$0xff]   ;;  %v1561_v28 = vld [vmem:[%s1735_s1 + $0xcc] ss:$16 sps:$4 sm:$0xff]  }
  0x1f   : > { %v1568_v29 = vld [vmem:[%s1735_s1 + $0xc0] ss:$16 sps:$4 sm:$0xff]   ;;  %v1573_v30 = vld [vmem:[%s1735_s1 + $0xc8] ss:$16 sps:$4 sm:$0xff]   ;;  %v1580_v31 = vld [vmem:[%s1735_s1 + $0xe4] ss:$16 sps:$4 sm:$0xff]  }
  0x20   : > { %v1585_v32 = vld [vmem:[%s1735_s1 + $0xec] ss:$16 sps:$4 sm:$0xff]   ;;  %v1592_v33 = vld [vmem:[%s1735_s1 + $0xe0] ss:$16 sps:$4 sm:$0xff]   ;;  %v1597_v34 = vld [vmem:[%s1735_s1 + $0xe8] ss:$16 sps:$4 sm:$0xff]  }
  0x21   : > { %572 = vmatpush1.bf16.msra.mxu0 %v1470_v13  ;;  %613 = vmatpush1.bf16.msra.mxu1 %v1475_v14  ;;  %v1602_v35 = vld [vmem:[%s1739_s5] sm:$0x3]  ;;  %v372_v38 = vshrl.u32 %v371_v37, 7  ;;  %v1332_v39 = vmov 1983009808   ;;  %p851_p6 = scmp.lt.s32.totalorder %s850_s10, 8 }
  0x22   : > { %573 = vmatprep.subr.bf16.mxu0 %v1482_v15  ;;  %614 = vmatprep.subr.bf16.mxu1 %v1489_v16  ;;  %v406_v36 = vpack.c.bf16 %v1602_v35, %v1602_v35  ;;  %v390_v40 = vunpack.c.l.s4 %v1332_v39  ;;  %v364_v45 = vld [vmem:[%s1736_s2] sm:$0xf]  ;;  %s704_s7 = scalar_select %p298_p4, 1, 0 }
  0x23   : > { %v373_v41 = vsub.s32 0, %v372_v38  ;;  %v377_v42 = vsub.s32 1, %v372_v38  ;;  %v381_v43 = vsub.s32 2, %v372_v38  ;;  %v385_v44 = vsub.s32 3, %v372_v38  ;;  %v1654_v56 = vld [vmem:[%s1395_s30] sm:$0xff]  }
  0x24   : > { %v391_v46 = vunpack.c.0.s8 %v390_v40  ;;  %v369_v59 = vunpack.c.l.bf16 %v1654_v56  ;;  %s852_s11 = scalar_select %p851_p6, 1, 0 }
  0x25   : > { %574 = vmatpush1.bf16.msra.mxu0 %v1494_v17  ;;  %615 = vmatpush1.bf16.msra.mxu1 %v1501_v18  ;;  %v374_v47 = vrot.slane %v364_v45, %v373_v41  ;;  %v378_v48 = vrot.slane %v364_v45, %v377_v42  ;;  %v382_v49 = vrot.slane %v364_v45, %v381_v43 }
  0x26   : > { %575 = vmatprep.subr.bf16.mxu0 %v1506_v19  ;;  %616 = vmatprep.subr.bf16.mxu1 %v1513_v20  ;;  %v386_v50 = vrot.slane %v364_v45, %v385_v44  ;;  %v1649_v51 = vsub.s32 %v391_v46, %v372_v38 }
  0x27   : > { %v387_v52 = vcombine.low %v374_v47, %v378_v48 }
  0x28   : > { %v388_v53 = vcombine.low %v382_v49, %v386_v50 }
  0x29   : > { %576 = vmatpush1.bf16.msra.mxu0 %v1518_v21  ;;  %617 = vmatpush1.bf16.msra.mxu1 %v1523_v22  ;;  %v395_v54 = vrot.slane %v387_v52, %v1649_v51 }
  0x2a   : > { %577 = vmatprep.subr.bf16.mxu0 %v1530_v23  ;;  %618 = vmatprep.subr.bf16.mxu1 %v1537_v24  ;;  %v402_v55 = vrot.slane %v388_v53, %v1649_v51 }
  0x2c   : > { %v1657_v60 = vcombine.low %v395_v54, %v402_v55  ;;  %v367_v55 = vld [vmem:[%s1740_s6] sm:$0x3] }
  0x2d   : > { %578 = vmatpush1.bf16.msra.mxu0 %v1544_v25  ;;  %619 = vmatpush1.bf16.msra.mxu1 %v1549_v26 }
  0x2e   : > { %579 = vmatprep.subr.bf16.mxu0 %v1556_v27  ;;  %620 = vmatprep.subr.bf16.mxu1 %v1561_v28  ;;  %v405_v38 = vadd.f32 %v1657_v60, %v369_v59 }
  0x31   : > { %580 = vmatpush1.bf16.msra.mxu0 %v1568_v29  ;;  %621 = vmatpush1.bf16.msra.mxu1 %v1573_v30 }
  0x32   : > { %581 = vmatprep.subr.bf16.mxu0 %v1580_v31  ;;  %622 = vmatprep.subr.bf16.mxu1 %v1585_v32 }
  0x35   : > { %582 = vmatpush1.bf16.msra.mxu0 %v1592_v33  ;;  %623 = vmatpush1.bf16.msra.mxu1 %v1597_v34 }
  0x36   : > { %714 = vmatprep.subr.bf16.mxu0 %v1412_v2  ;;  %755 = vmatprep.subr.bf16.mxu1 %v1417_v3 }
  0x38   : > { %600 = vmatmul.mubr.bf16.vlgmr.msra.gmra.mrb[0].mxu0 %v406_v36  ;;  %641 = vmatmul.mubr.bf16.vlgmr.msra.gmra.mrb[0].mxu1 %v406_v36 }
  0x39   : > { %715 = vmatpush1.bf16.msra.mxu0 %v1425_v5  ;;  %756 = vmatpush1.bf16.msra.mxu1 %v1430_v6 }
  0x3a   : > { %716 = vmatprep.subr.bf16.mxu0 %v1436_v7  ;;  %757 = vmatprep.subr.bf16.mxu1 %v1443_v8 }
  0x3b   : > { %746 = vmatprep.mubr.bf16.mxu0 %v1331_v4  ;;  %787 = vmatprep.mubr.bf16.mxu1 %v1331_v4 }
  0x3d   : > { %717 = vmatpush1.bf16.msra.mxu0 %v1448_v9  ;;  %758 = vmatpush1.bf16.msra.mxu1 %v1454_v10 }
  0x3e   : > { %718 = vmatprep.subr.bf16.mxu0 %v1460_v11  ;;  %759 = vmatprep.subr.bf16.mxu1 %v1465_v12 }
  0x41   : > { %719 = vmatpush1.bf16.msra.mxu0 %v1470_v13  ;;  %760 = vmatpush1.bf16.msra.mxu1 %v1475_v14 }
  0x42   : > { %720 = vmatprep.subr.bf16.mxu0 %v1482_v15  ;;  %761 = vmatprep.subr.bf16.mxu1 %v1489_v16 }
  0x45   : > { %721 = vmatpush1.bf16.msra.mxu0 %v1494_v17  ;;  %762 = vmatpush1.bf16.msra.mxu1 %v1501_v18 }
  0x46   : > { %722 = vmatprep.subr.bf16.mxu0 %v1506_v19  ;;  %763 = vmatprep.subr.bf16.mxu1 %v1513_v20 }
  0x49   : > { %723 = vmatpush1.bf16.msra.mxu0 %v1518_v21  ;;  %764 = vmatpush1.bf16.msra.mxu1 %v1523_v22 }
  0x4a   : > { %724 = vmatprep.subr.bf16.mxu0 %v1530_v23  ;;  %765 = vmatprep.subr.bf16.mxu1 %v1537_v24 }
  0x4d   : > { %725 = vmatpush1.bf16.msra.mxu0 %v1544_v25  ;;  %766 = vmatpush1.bf16.msra.mxu1 %v1549_v26 }
  0x4e   : > { %726 = vmatprep.subr.bf16.mxu0 %v1556_v27  ;;  %767 = vmatprep.subr.bf16.mxu1 %v1561_v28 }
  0x51   : > { %727 = vmatpush1.bf16.msra.mxu0 %v1568_v29  ;;  %768 = vmatpush1.bf16.msra.mxu1 %v1573_v30 }
  0x52   : > { %728 = vmatprep.subr.bf16.mxu0 %v1580_v31  ;;  %769 = vmatprep.subr.bf16.mxu1 %v1585_v32 }
  0x55   : > { %729 = vmatpush1.bf16.msra.mxu0 %v1592_v33  ;;  %770 = vmatpush1.bf16.msra.mxu1 %v1597_v34 }
  0x56   : > { %862 = vmatprep.subr.bf16.mxu0 %v1412_v2  ;;  %903 = vmatprep.subr.bf16.mxu1 %v1417_v3 }
 0x10b   : > { %v601_v57 = vpop.f32.mrb[0].mxu0  ;;  %v642_v58 = vpop.f32.mrb[0].mxu1 }
 0x10c   : > { %v603_v61 = vpop.f32.mrb[1].mxu0  ;;  %v644_v62 = vpop.f32.mrb[1].mxu1 }
 0x10d   : > { %v653_v63 = vcombine.low %v601_v57, %v603_v61  ;;  %v654_v0 = vcombine.low %v642_v58, %v644_v62  ;;  %v605_v1 = vpop.f32.mrb[2].mxu0  ;;  %v646_v2 = vpop.f32.mrb[2].mxu1  ;;  %v705_v58 = vstv %s704_s7 }
 0x10e   : > { %v606_v3 = vpop.f32.mrb[3].mxu0  ;;  %v647_v36 = vpop.f32.mrb[3].mxu1  ;;  %vm706_vm0 = vcmp.eq.s32.totalorder %v705_v58, 1 }
 0x10f   : > { %v661_v37 = vrot.slane %v653_v63, %v1649_v51  ;;  %v668_v39 = vrot.slane %v654_v0, %v1649_v51 }
 0x111   : > { %v669_v40 = vcombine.low %v661_v37, %v668_v39 }
 0x113   : > { %v671_v41 = vadd.f32 %v669_v40, %v405_v38 }
 0x115   : > { %v1170_v42 = vmul.f32 -1.442695, %v671_v41  ;;  %v679_v43 = vrot.slane %v671_v41, 2  ;;  %v690_v45 = vrot.slane %v671_v41, 6  ;;  %v687_v48 = vrot.slane %v671_v41, 4 }
 0x117   : > { %1259 = vpow2.f32 %v1170_v42  ;;  %v1171_v44 = vmul.f32 -1.442695, %v679_v43  ;;  %v1172_v46 = vmul.f32 -1.442695, %v690_v45 }
 0x119   : > { %1261 = vpow2.f32 %v1171_v44 }
 0x11a   : > { %1263 = vpow2.f32 %v1172_v46 }
 0x121   : > { %v1260_v47 = vpop.eup %1259 }
 0x122   : > { %v675_v49 = vadd.f32 1.0, %v1260_v47  ;;  %v1177_v47 = vld [vmem:[%s1395_s30 + $0x8] sm:$0xf]  ;;  %s998_s30 = sadd.s32 2, %s1386_s25 }
 0x123   : > { %v1262_v50 = vpop.eup %1261  ;;  %p999_p7 = scmp.lt.s32.totalorder %s998_s30, 8 }
 0x124   : > { %1265 = vrcp.f32 %v675_v49  ;;  %v684_v52 = vadd.f32 1.0, %v1262_v50  ;;  %v1264_v53 = vpop.eup %1263  ;;  %v859_v50 = vunpack.c.l.bf16 %v1177_v47 }
 0x125   : > { %1267 = vtanh.f32 %v687_v48  ;;  %v695_v61 = vadd.f32 1.0, %v1264_v53  ;;  %s1000_s12 = scalar_select %p999_p7, 1, 0 }
 0x126   : > { %1269 = vrcp.f32 %v684_v52 }
 0x127   : > { %1271 = vrcp.f32 %v695_v61 }
 0x12e   : > { %v1266_v54 = vpop.eup %1265 }
 0x12f   : > { %v1268_v57 = vpop.eup %1267 }
 0x130   : > { %v1270_v59 = vpop.eup %1269  ;;  %v699_v63 = vmul.f32 %v1268_v57, %v1266_v54 }
 0x131   : > { %v698_v62 = vmul.f32 %v1270_v59, %v367_v55  ;;  %v1272_v2 = vpop.eup %1271 }
 0x133   : > { %v700_v0 = vadd.f32 %v699_v63, %v698_v62  ;;  %v860_v63 = vadd.f32 %v859_v50, %v1657_v60 }
 0x135   : > { %1273 = vtanh.f32 %v700_v0  ;;  %v1667_v1 = vsel %vm706_vm0, %v700_v0, %v367_v55 }
 0x13f   : > { %v1274_v3 = vpop.eup %1273 }
 0x140   : > { %v702_v36 = vmul.f32 %v1274_v3, %v1272_v2 }
 0x142   : > { %v1670_v37 = vsel %vm706_vm0, %v702_v36, %v1602_v35 }
 0x143   : > { %v713_v38 = vpack.c.bf16 %v1670_v37, %v1670_v37 }
 0x145   : > { %747 = vmatmul.mubr.bf16.vlgmr.msra.gmra.mrb[4].mxu0 %v713_v38  ;;  %788 = vmatmul.mubr.bf16.vlgmr.msra.gmra.mrb[4].mxu1 %v713_v38 }
 0x146   : > { %863 = vmatpush1.bf16.msra.mxu0 %v1425_v5  ;;  %904 = vmatpush1.bf16.msra.mxu1 %v1430_v6  ;;  %v711_v6 = vunpack.c.h.bf16 %v1654_v56 }
 0x147   : > { %864 = vmatprep.subr.bf16.mxu0 %v1436_v7  ;;  %905 = vmatprep.subr.bf16.mxu1 %v1443_v8 }
 0x148   : > { %894 = vmatprep.mubr.bf16.mxu0 %v1331_v4  ;;  %935 = vmatprep.mubr.bf16.mxu1 %v1331_v4 }
 0x14a   : > { %865 = vmatpush1.bf16.msra.mxu0 %v1448_v9  ;;  %906 = vmatpush1.bf16.msra.mxu1 %v1454_v10 }
 0x14b   : > { %866 = vmatprep.subr.bf16.mxu0 %v1460_v11  ;;  %907 = vmatprep.subr.bf16.mxu1 %v1465_v12 }
 0x14e   : > { %867 = vmatpush1.bf16.msra.mxu0 %v1470_v13  ;;  %908 = vmatpush1.bf16.msra.mxu1 %v1475_v14 }
 0x14f   : > { %868 = vmatprep.subr.bf16.mxu0 %v1482_v15  ;;  %909 = vmatprep.subr.bf16.mxu1 %v1489_v16  ;;  %v712_v16 = vadd.f32 %v711_v6, %v1657_v60 }
 0x152   : > { %869 = vmatpush1.bf16.msra.mxu0 %v1494_v17  ;;  %910 = vmatpush1.bf16.msra.mxu1 %v1501_v18 }
 0x153   : > { %870 = vmatprep.subr.bf16.mxu0 %v1506_v19  ;;  %911 = vmatprep.subr.bf16.mxu1 %v1513_v20 }
 0x156   : > { %871 = vmatpush1.bf16.msra.mxu0 %v1518_v21  ;;  %912 = vmatpush1.bf16.msra.mxu1 %v1523_v22 }
 0x157   : > { %872 = vmatprep.subr.bf16.mxu0 %v1530_v23  ;;  %913 = vmatprep.subr.bf16.mxu1 %v1537_v24 }
 0x15a   : > { %873 = vmatpush1.bf16.msra.mxu0 %v1544_v25  ;;  %914 = vmatpush1.bf16.msra.mxu1 %v1549_v26 }
 0x15b   : > { %874 = vmatprep.subr.bf16.mxu0 %v1556_v27  ;;  %915 = vmatprep.subr.bf16.mxu1 %v1561_v28 }
 0x15e   : > { %875 = vmatpush1.bf16.msra.mxu0 %v1568_v29  ;;  %916 = vmatpush1.bf16.msra.mxu1 %v1573_v30 }
 0x15f   : > { %876 = vmatprep.subr.bf16.mxu0 %v1580_v31  ;;  %917 = vmatprep.subr.bf16.mxu1 %v1585_v32 }
 0x162   : > { %877 = vmatpush1.bf16.msra.mxu0 %v1592_v33  ;;  %918 = vmatpush1.bf16.msra.mxu1 %v1597_v34  ;;  %v853_v33 = vstv %s852_s11 }
 0x163   : > { %vm854_vm1 = vcmp.eq.s32.totalorder %v853_v33, 1 }
 0x218   : > { %v748_v4 = vpop.f32.mrb[4].mxu0  ;;  %v789_v5 = vpop.f32.mrb[4].mxu1 }
 0x219   : > { %v750_v7 = vpop.f32.mrb[5].mxu0  ;;  %v791_v8 = vpop.f32.mrb[5].mxu1 }
 0x21a   : > { %v800_v9 = vcombine.low %v748_v4, %v750_v7  ;;  %v801_v10 = vcombine.low %v789_v5, %v791_v8  ;;  %v752_v11 = vpop.f32.mrb[6].mxu0  ;;  %v793_v12 = vpop.f32.mrb[6].mxu1 }
 0x21b   : > { %v753_v13 = vpop.f32.mrb[7].mxu0  ;;  %v794_v14 = vpop.f32.mrb[7].mxu1  ;;  %v1001_v11 = vstv %s1000_s12 }
 0x21c   : > { %v808_v15 = vrot.slane %v800_v9, %v1649_v51  ;;  %v815_v17 = vrot.slane %v801_v10, %v1649_v51  ;;  %vm1002_vm2 = vcmp.eq.s32.totalorder %v1001_v11, 1 }
 0x21e   : > { %v816_v18 = vcombine.low %v808_v15, %v815_v17 }
 0x220   : > { %v818_v19 = vadd.f32 %v816_v18, %v712_v16 }
 0x222   : > { %v1174_v20 = vmul.f32 -1.442695, %v818_v19  ;;  %v826_v21 = vrot.slane %v818_v19, 2  ;;  %v837_v23 = vrot.slane %v818_v19, 6  ;;  %v834_v26 = vrot.slane %v818_v19, 4 }
 0x224   : > { %1275 = vpow2.f32 %v1174_v20  ;;  %v1175_v22 = vmul.f32 -1.442695, %v826_v21  ;;  %v1176_v24 = vmul.f32 -1.442695, %v837_v23 }
 0x226   : > { %1277 = vpow2.f32 %v1175_v22 }
 0x227   : > { %1279 = vpow2.f32 %v1176_v24 }
 0x22e   : > { %v1276_v25 = vpop.eup %1275 }
 0x22f   : > { %v822_v27 = vadd.f32 1.0, %v1276_v25 }
 0x230   : > { %v1278_v28 = vpop.eup %1277 }
 0x231   : > { %1281 = vrcp.f32 %v822_v27  ;;  %v831_v29 = vadd.f32 1.0, %v1278_v28  ;;  %v1280_v30 = vpop.eup %1279 }
 0x232   : > { %1283 = vtanh.f32 %v834_v26  ;;  %v842_v35 = vadd.f32 1.0, %v1280_v30 }
 0x233   : > { %1285 = vrcp.f32 %v831_v29 }
 0x234   : > { %1287 = vrcp.f32 %v842_v35 }
 0x23b   : > { %v1282_v31 = vpop.eup %1281 }
 0x23c   : > { %v1284_v32 = vpop.eup %1283 }
 0x23d   : > { %v1286_v34 = vpop.eup %1285  ;;  %v846_v39 = vmul.f32 %v1284_v32, %v1282_v31 }
 0x23e   : > { %v845_v56 = vmul.f32 %v1286_v34, %v1667_v1  ;;  %v1288_v42 = vpop.eup %1287 }
 0x240   : > { %v847_v40 = vadd.f32 %v846_v39, %v845_v56 }
 0x242   : > { %1289 = vtanh.f32 %v847_v40  ;;  %v856_v41 = vsel %vm854_vm1, %v847_v40, %v1667_v1 }
 0x24c   : > { %v1290_v43 = vpop.eup %1289 }
 0x24d   : > { %v849_v44 = vmul.f32 %v1290_v43, %v1288_v42 }
 0x24f   : > { %v855_v45 = vsel %vm854_vm1, %v849_v44, %v1670_v37 }
 0x250   : > { %v861_v46 = vpack.c.bf16 %v855_v45, %v855_v45 }
 0x252   : > { %895 = vmatmul.mubr.bf16.vlgmr.msra.gmra.mrb[8].mxu0 %v861_v46  ;;  %936 = vmatmul.mubr.bf16.vlgmr.msra.gmra.mrb[8].mxu1 %v861_v46 }
 0x325   : > { %v896_v48 = vpop.f32.mrb[8].mxu0  ;;  %v937_v49 = vpop.f32.mrb[8].mxu1 }
 0x326   : > { %v898_v52 = vpop.f32.mrb[9].mxu0  ;;  %v939_v53 = vpop.f32.mrb[9].mxu1 }
 0x327   : > { %v948_v54 = vcombine.low %v896_v48, %v898_v52  ;;  %v949_v55 = vcombine.low %v937_v49, %v939_v53  ;;  %v900_v57 = vpop.f32.mrb[10].mxu0  ;;  %v941_v58 = vpop.f32.mrb[10].mxu1 }
 0x328   : > { %v901_v59 = vpop.f32.mrb[11].mxu0  ;;  %v942_v61 = vpop.f32.mrb[11].mxu1 }
 0x329   : > { %v956_v62 = vrot.slane %v948_v54, %v1649_v51  ;;  %v963_v0 = vrot.slane %v949_v55, %v1649_v51 }
 0x32b   : > { %v964_v1 = vcombine.low %v956_v62, %v963_v0 }
 0x32d   : > { %v966_v2 = vadd.f32 %v964_v1, %v860_v63 }
 0x32f   : > { %v1178_v3 = vmul.f32 -1.442695, %v966_v2  ;;  %v974_v36 = vrot.slane %v966_v2, 2  ;;  %v985_v38 = vrot.slane %v966_v2, 6  ;;  %v982_v6 = vrot.slane %v966_v2, 4 }
 0x331   : > { %1291 = vpow2.f32 %v1178_v3  ;;  %v1179_v37 = vmul.f32 -1.442695, %v974_v36  ;;  %v1180_v4 = vmul.f32 -1.442695, %v985_v38 }
 0x333   : > { %1293 = vpow2.f32 %v1179_v37 }
 0x334   : > { %1295 = vpow2.f32 %v1180_v4 }
 0x33b   : > { %v1292_v5 = vpop.eup %1291 }
 0x33c   : > { %v970_v7 = vadd.f32 1.0, %v1292_v5 }
 0x33d   : > { %v1294_v8 = vpop.eup %1293 }
 0x33e   : > { %1297 = vrcp.f32 %v970_v7  ;;  %v979_v9 = vadd.f32 1.0, %v1294_v8  ;;  %v1296_v51 = vpop.eup %1295 }
 0x33f   : > { %1299 = vtanh.f32 %v982_v6  ;;  %v990_v13 = vadd.f32 1.0, %v1296_v51 }
 0x340   : > { %1301 = vrcp.f32 %v979_v9 }
 0x341   : > { %1303 = vrcp.f32 %v990_v13 }
 0x348   : > { %v1298_v60 = vpop.eup %1297 }
 0x349   : > { %v1300_v10 = vpop.eup %1299 }
 0x34a   : > { %v1302_v12 = vpop.eup %1301  ;;  %v994_v15 = vmul.f32 %v1300_v10, %v1298_v60 }
 0x34b   : > { %v993_v14 = vmul.f32 %v1302_v12, %v856_v41  ;;  %v1304_v18 = vpop.eup %1303 }
 0x34d   : > { %v995_v16 = vadd.f32 %v994_v15, %v993_v14 }
 0x34f   : > { %1305 = vtanh.f32 %v995_v16  ;;  %v1004_v17 = vsel %vm1002_vm2, %v995_v16, %v856_v41 }
 0x350   : > { %1006 = vst [vmem:[%s1740_s6] sm:$0x3] %v1004_v17 }
 0x359   : > { %v1306_v19 = vpop.eup %1305 }
 0x35a   : > { %v997_v20 = vmul.f32 %v1306_v19, %v1304_v18 }
 0x35c   : > { %v1003_v21 = vsel %vm1002_vm2, %v997_v20, %v855_v45 }
 0x35d   : > { %1005 = vst [vmem:[%s1739_s5] sm:$0x3] %v1003_v21 }
 0x35e PF: > { %s17_s23 = sadd.s32 1, %s1329_s23   ;;  %s1741_s21 = smov %s1325_s22 }
 0x35f   : > { %p14_p8 = scmp.ge.s32.totalorder %s17_s23, 5   ;;  %s1742_s22 = smov %s1744_s24 }
 0x361   :  { %16 = sbr.rel (!%p14_p8) target bundleno = 2 (0x2), region = 94 }

</bundles_post_ra>
